<compile_context>
chip_gen: v7x
topology: tpu7x:2x2x1
jax: 0.10.0
libtpu: 0.0.40
codegen_flags: <defaults>
</compile_context>

<pallas_src>
import jax
import jax.numpy as jnp
from jax.experimental import pallas as pl
from jax.experimental.pallas import tpu as pltpu


def _res_block_kernel(x_ref, w_ref, b_ref, o_ref):
    """out = x + relu(w @ x + b) on a (C, TL) channels-x-pixels tile.

    x_ref: (C, TL)  channels on sublanes, spatial pixels on lanes
    w_ref: (C, C)   1x1-conv weight, (C_out, C_in)
    b_ref: (C, 1)   bias (broadcast along lanes)
    o_ref: (C, TL)
    """
    x = x_ref[...]
    # codeblock: 1x1 conv == channel matmul.  Native-dtype operands feed the
    # MXU; accumulate in f32.  (At very small C this is mostly DMA/grid-bound
    # anyway; an unrolled VPU multiply-add would only shave MXU pop latency.)
    y = jnp.dot(w_ref[...], x, preferred_element_type=jnp.float32)
    y = jnp.maximum(y + b_ref[...], 0.0)
    # ResConnector: out = input + codeblock(input).  Reuse the loaded x tile.
    o_ref[...] = (y + x).astype(o_ref.dtype)


def res_connector(x_nchw, weight, bias, *,
                  target_tile_bytes=2 << 20,     # ~2 MiB x-tile per grid step
                  vmem_budget_bytes=24 << 20):   # headroom vs v7x 32 MiB scoped
    """ResConnector with codeblock = Conv2d(C, C, 1) + ReLU, fused in Pallas.

    x_nchw: (N, C, H, W);  weight: (C_out, C_in);  bias: (C_out,).
    """
    N, C, H, W = x_nchw.shape
    L = H * W
    L_rounded = pl.cdiv(L, 128) * 128

    itemsize = jnp.dtype(x_nchw.dtype).itemsize
    w_itemsize = jnp.dtype(weight.dtype).itemsize

    # --- lane tile selection (multiple of 128) -----------------------------
    # Mem-bound op: MiB-scale per-step tiles amortize the ~0.35us/step grid
    # overhead and keep stores lane-dense.
    tl = (target_tile_bytes // (C * itemsize)) // 128 * 128
    tl = max(tl, 512)

    # VMEM accounting: double-buffered x & out tiles (4 * C * tl * itemsize)
    # plus the single-buffered resident weight/bias.  Budget is conservative
    # so the same choice fits v5e/v6e (128 MiB) and v7x (64 MiB physical,
    # 32 MiB scoped default) without a vmem_limit override.
    resident_bytes = C * C * w_itemsize + C * w_itemsize
    max_tl_vmem = max(
        128, ((vmem_budget_bytes - resident_bytes) // (4 * C * itemsize)) // 128 * 128)
    # TODO(synk): for very large C (weight alone near the scoped VMEM limit,
    # e.g. C >= ~2.5K f32 on v7x) switch to a K-tiled reduction grid axis with
    # an f32 accumulator instead of a fully resident weight.
    tl = min(tl, max_tl_vmem)
    tl = min(tl, L_rounded)

    # v7x has 2 TensorCores: with a single image make sure the spatial axis
    # has >= 2 grid steps so both cores get work via "parallel" semantics.
    if N == 1:
        half = ((L_rounded // 2) // 128) * 128
        if half >= 128:
            tl = min(tl, half)

    grid = (N, pl.cdiv(L, tl))

    x3 = x_nchw.reshape(N, C, L)   # free reshape, no transpose, no padding
    b2 = bias.reshape(C, 1)

    cost = pl.CostEstimate(
        flops=2 * N * C * C * L + 3 * N * C * L,
        transcendentals=0,
        bytes_accessed=2 * N * C * L * itemsize
        + int(weight.size) * w_itemsize
        + int(bias.size) * jnp.dtype(bias.dtype).itemsize,
    )

    out3 = pl.pallas_call(
        _res_block_kernel,
        out_shape=jax.ShapeDtypeStruct((N, C, L), x_nchw.dtype),
        grid_spec=pltpu.PrefetchScalarGridSpec(
            num_scalar_prefetch=0,
            grid=grid,
            in_specs=[
                pl.BlockSpec((None, C, tl), lambda n, l: (n, 0, l)),
                # Weight/bias: constant index_map -> resident; single-buffer
                # to free VMEM for larger lane tiles at big C.
                pl.BlockSpec((C, C), lambda n, l: (0, 0),
                             pipeline_mode=pl.Buffered(1)),
                pl.BlockSpec((C, 1), lambda n, l: (0, 0),
                             pipeline_mode=pl.Buffered(1)),
            ],
            out_specs=pl.BlockSpec((None, C, tl), lambda n, l: (n, 0, l)),
        ),
        compiler_params=pltpu.CompilerParams(
            dimension_semantics=("parallel", "parallel")),
        cost_estimate=cost,
    )(x3, weight, b2)

    return out3.reshape(N, C, H, W)


def _reference(x_nchw, weight, bias):
    # Pure-JAX reference: out = x + relu(conv1x1(x))
    y = jnp.einsum("oc,nchw->nohw", weight, x_nchw) + bias[None, :, None, None]
    return x_nchw + jnp.maximum(y, 0.0)


if __name__ == "__main__":
    key = jax.random.PRNGKey(0)
    kx, kw, kb, kx2, kx3 = jax.random.split(key, 5)

    # Deterministic synthetic parameters for the codeblock (Conv2d(C, C, 1)).
    N, C, H, W = 2, 4, 16, 16
    x = jax.random.normal(kx, (N, C, H, W), dtype=jnp.float32)
    weight = jax.random.normal(kw, (C, C), dtype=jnp.float32) * 0.1
    bias = jax.random.normal(kb, (C,), dtype=jnp.float32) * 0.1

    out = res_connector(x, weight, bias)
    jax.block_until_ready(out)
    ref = _reference(x, weight, bias)
    assert out.shape == x.shape and out.dtype == x.dtype
    assert jnp.allclose(out, ref, atol=1e-5, rtol=1e-5)

    # Ragged spatial size: exercises the no-pad partial last block path.
    x2 = jax.random.normal(kx2, (N, C, 5, 5), dtype=jnp.float32)
    out2 = res_connector(x2, weight, bias)
    jax.block_until_ready(out2)
    assert jnp.allclose(out2, _reference(x2, weight, bias), atol=1e-5, rtol=1e-5)

    # N == 1: exercises the >=2-spatial-steps split (v7x core sharding).
    x3 = jax.random.normal(kx3, (1, C, 16, 16), dtype=jnp.float32)
    out3 = res_connector(x3, weight, bias)
    jax.block_until_ready(out3)
    assert jnp.allclose(out3, _reference(x3, weight, bias), atol=1e-5, rtol=1e-5)

    print("KERNEL_OK")
</pallas_src>

<mosaic_0001>
module attributes {stable_mosaic.version = 11 : i64} {
  func.func @_res_block_kernel(%arg0: i32, %arg1: i32, %arg2: memref<1x4x256xf32, #tpu.memory_space<vmem>>, %arg3: memref<4x4xf32, #tpu.memory_space<vmem>>, %arg4: memref<4x1xf32, #tpu.memory_space<vmem>>, %arg5: memref<1x4x256xf32, #tpu.memory_space<vmem>>) attributes {dimension_semantics = [#tpu.dimension_semantics<parallel>, #tpu.dimension_semantics<parallel>], iteration_bounds = array<i64: 2, 1>, scalar_prefetch = 0 : i64, scratch_operands = 0 : i64, tpu.core_type = #tpu.core_type<tc>, window_params = [{transform_indices = @transform_0, window_bounds = array<i64: 1, 4, 256>}, {pipeline_mode = #tpu.pipeline_mode<synchronous>, transform_indices = @transform_1, window_bounds = array<i64: 4, 4>}, {pipeline_mode = #tpu.pipeline_mode<synchronous>, transform_indices = @transform_2, window_bounds = array<i64: 4, 1>}, {transform_indices = @transform_3, window_bounds = array<i64: 1, 4, 256>}]} {
    %c0 = arith.constant 0 : index
    %c0_0 = arith.constant 0 : index
    %c0_1 = arith.constant 0 : index
    %0 = vector.load %arg2[%c0, %c0_0, %c0_1] : memref<1x4x256xf32, #tpu.memory_space<vmem>>, vector<1x4x256xf32>
    %1 = vector.shape_cast %0 : vector<1x4x256xf32> to vector<4x256xf32>
    %c0_2 = arith.constant 0 : index
    %c0_3 = arith.constant 0 : index
    %2 = vector.load %arg3[%c0_2, %c0_3] : memref<4x4xf32, #tpu.memory_space<vmem>>, vector<4x4xf32>
    %cst = arith.constant dense<0.000000e+00> : vector<4x256xf32>
    %3 = tpu.matmul %2, %1, %cst {dimension_numbers = #tpu.dot_dimension_numbers<[1], [0], [0], [1], [0, 0, 1, 1], [], []>} : vector<4x4xf32>, vector<4x256xf32>, vector<4x256xf32> -> vector<4x256xf32>
    %c0_4 = arith.constant 0 : index
    %c0_5 = arith.constant 0 : index
    %4 = vector.load %arg4[%c0_4, %c0_5] : memref<4x1xf32, #tpu.memory_space<vmem>>, vector<4x1xf32>
    %5 = vector.broadcast %4 : vector<4x1xf32> to vector<4x256xf32>
    %6 = arith.addf %3, %5 : vector<4x256xf32>
    %cst_6 = arith.constant 0.000000e+00 : f32
    %7 = vector.broadcast %cst_6 : f32 to vector<4x256xf32>
    %8 = arith.maximumf %6, %7 : vector<4x256xf32>
    %9 = arith.addf %8, %1 : vector<4x256xf32>
    %c0_7 = arith.constant 0 : index
    %c0_8 = arith.constant 0 : index
    %c0_9 = arith.constant 0 : index
    %10 = vector.load %arg5[%c0_7, %c0_8, %c0_9] : memref<1x4x256xf32, #tpu.memory_space<vmem>>, vector<1x4x256xf32>
    %11 = vector.shape_cast %10 : vector<1x4x256xf32> to vector<4x256xf32>
    %12 = vector.shape_cast %9 : vector<4x256xf32> to vector<1x4x256xf32>
    tpu.vector_store %arg5[%c0_7, %c0_8, %c0_9], %12 {strides = array<i32>} : memref<1x4x256xf32, #tpu.memory_space<vmem>>, vector<1x4x256xf32>,
    return
  }
  func.func @transform_0(%arg0: i32, %arg1: i32) -> (i32, i32, i32) {
    %c0_i32 = arith.constant 0 : i32
    %c0_i32_0 = arith.constant 0 : i32
    return %arg0, %c0_i32, %arg1 : i32, i32, i32
  }
  func.func @transform_1(%arg0: i32, %arg1: i32) -> (i32, i32) {
    %c0_i32 = arith.constant 0 : i32
    %c0_i32_0 = arith.constant 0 : i32
    %c0_i32_1 = arith.constant 0 : i32
    return %c0_i32, %c0_i32_0 : i32, i32
  }
  func.func @transform_2(%arg0: i32, %arg1: i32) -> (i32, i32) {
    %c0_i32 = arith.constant 0 : i32
    %c0_i32_0 = arith.constant 0 : i32
    %c0_i32_1 = arith.constant 0 : i32
    return %c0_i32, %c0_i32_0 : i32, i32
  }
  func.func @transform_3(%arg0: i32, %arg1: i32) -> (i32, i32, i32) {
    %c0_i32 = arith.constant 0 : i32
    %c0_i32_0 = arith.constant 0 : i32
    return %arg0, %c0_i32, %arg1 : i32, i32, i32
  }
}

</mosaic_0001>

<bundles_post_ra>
// kernel: tpu_custom_call.1
= control target key start
LH: loop header
LB: loop body
LE: loop exit
PB: predicated region body
PF: predicated region fallthrough
CT: control target
= control target key end

     0   :  { %8 = vsyncpa [#allocation3], 0  ;;  %s810_s0 = inlined_call_operand.hbm [shape: f32[2,4,256], index: 0, kind: input, shape index: {}]   ;;  %s811_s1 = inlined_call_operand.vmem [shape: f32[4,4], index: 1, kind: input, shape index: {}]   ;;  %s812_s2 = inlined_call_operand.vmem [shape: f32[4,1], index: 2, kind: input, shape index: {}]   ;;  %s813_s3 = inlined_call_operand.hbm [shape: f32[2,4,256], index: 3, kind: output, shape index: {}]  }
   0x1   :  { %10 = vsyncpa [#allocation3 + $0x1], 0 }
   0x2   :  { %11 = vsyncpa [#allocation4], 0 }
   0x3   :  { %13 = vsyncpa [#allocation4 + $0x1], 0  ;;  %s632_s12 = smov 0   ;;  %s634_s13 = smov 0  }
   0x4   :  { %s636_s14 = smov 0   ;;  %s638_s15 = smov 0  }
   0x5   :  { %s640_s16 = smov 0   ;;  %s642_s17 = smov 0  }
   0x6 LB: > { %s408_s18 = sadd.s32 4294967295, %s606_s17   ;;  %s409_s19 = sadd.s32 4294967294, %s606_s17   ;;  %s606_s17 = sphi %s642_s17, %s19_s17   ;;  %s602_s16 = sphi %s640_s16, %s829_s16   ;;  %s598_s15 = sphi %s638_s15, %s828_s15   ;;  %s594_s14 = sphi %s636_s14, %s827_s14   ;;  %s590_s13 = sphi %s634_s13, %s826_s13   ;;  %s586_s12 = sphi %s632_s12, %s825_s12  }
   0x7   : > { %s31_s20 = sadd.s32 1, %s602_s16  ;;  %s40_s21 = sadd.s32 1, %s594_s14 }
   0x8   : > { %p33_p0 = scmp.ge.s32.totalorder %s31_s20, 2  ;;  %p47_p1 = scmp.ne.s32.totalorder %s594_s14, %s590_s13 }
   0x9   : > { %p48_p2 = scmp.eq.s32.totalorder %s606_s17, 0  ;;  %p53_p3 = scmp.ne.s32.totalorder %s590_s13, %s586_s12 }
   0xa   : > { %s831_s20 = smov (%p33_p0, %s31_s20), 0  ;;  %p54_p5 = scmp.eq.s32.totalorder %s408_s18, 0 }
   0xb   : > { %p673_p4 = por %p48_p2, %p47_p1  ;;  %s35_s23 = ssub.s32 %s602_s16, %s831_s20 }
   0xc   : > { %p121_p6 = scmp.eq.s32.totalorder %s408_s18, 1  ;;  %p38_p7 = scmp.eq.s32.totalorder %s35_s23, 0 }
   0xd   : > { %p679_p8 = por %p54_p5, %p53_p3  ;;  %p127_p10 = scmp.eq.s32.totalorder %s409_s19, 1 }
   0xe   : > { %p683_p9 = por %p121_p6, %p47_p1  ;;  %p440_p13 = scmp.lt.s32.totalorder %s606_s17, 2 }
   0xf   : > { %s688_s26 = scalar_select %p38_p7, %s594_s14, %s40_s21  }
  0x10   : > { %s817_s25 = scalar_select %p683_p9, 1, 0 }
  0x11   : > { %p690_p11 = por %p127_p10, %p53_p3  ;;  %s153_s28 = sand.u32 1, %s594_s14  }
  0x12   : > { %s412_s29 = sshll.u32 %s153_s28, 3  ;;  %s426_s30 = sshll.u32 %s602_s16, 7 }
  0x13   : > { %s818_s27 = scalar_select %p690_p11, 1, 0 }
  0x14   : > { %s701_s6 = scalar_lea.hbm %s810_s0, %s426_s30  ;;  %s157_s7 = scalar_lea.vmem [#allocation2], %s412_s29 }
  0x15   : > { %s167_s8 = sshll.u32 %s157_s7, 4  ;;  %p707_p0 = pnand %p440_p13, %p673_p4  ;;  %s703_s8 = int_to_ptr.vmem [resolvable:$true] %s167_s8 }
  0x16   : > { %s154_s10 = scalar_lea.sflag [#allocation3], %s153_s28  ;;  %s494_s11 = scalar_lea.hbm %s701_s6, 128 }
  0x17   : > { %p495_p3 = scmp.ne.s32.totalorder %s701_s6, %s494_s11  ;;  %p496_p5 = pneg %p707_p0 }
  0x18   : > { %s499_s21 = scalar_lea.hbm %s810_s0, 256  ;;  %p500_p4 = scmp.lt.u32.totalorder %s701_s6, %s810_s0 }
  0x19   : > { %p497_p6 = pnand %p496_p5, %p495_p3  ;;  %p501_p10 = scmp.lt.u32.totalorder %s499_s21, %s494_s11 }
  0x1a   : > { %p503_p12 = scmp.lt.u32.totalorder %s494_s11, %s701_s6 }
  0x1b   : > { %p498_p7 = pneg %p497_p6  ;;  %p502_p13 = por %p501_p10, %p500_p4 }
  0x1d   : > { %p504_p1 = por %p503_p12, %p502_p13 }
  0x1f   : > { %p505_p2 = pnand %p504_p1, %p498_p7 }
  0x21   : > { %508 = shalt.err (!%p505_p2)
}
  0x22   : > { %s509_s28 = scalar_lea.vmem %s703_s8, 128  ;;  %s608_s29 = smov [#allocation2]  }
  0x23   : > { %p510_p3 = scmp.ne.s32.totalorder %s703_s8, %s509_s28  ;;  %s514_s30 = sshll.u32 %s608_s29, 4  ;;  %s515_s30 = int_to_ptr.vmem [resolvable:$false] %s514_s30 }
  0x24   : > { %s516_s4 = scalar_lea.vmem %s515_s30, 256  ;;  %p517_p9 = scmp.lt.s32.totalorder %s703_s8, %s515_s30 }
  0x25   : > { %p512_p6 = pnand %p510_p3, %p496_p5  ;;  %p518_p4 = scmp.lt.s32.totalorder %s516_s4, %s509_s28 }
  0x27   : > { %p513_p11 = pneg %p512_p6  ;;  %p519_p10 = por %p518_p4, %p517_p9 }
  0x29   : > { %p520_p12 = pnand %p519_p10, %p513_p11 }
  0x2b   : > { %523 = shalt.err (!%p520_p12)
}
  0x2c   : > { %435 = dma.hbm_to_vmem [thread:$0]  (!%p707_p0), %s701_s6, 128, %s703_s8, %s154_s10  }
  0x2d   : > { %p820_p1 = scmp.lt.s32.totalorder %s606_s17, 3  ;;  %p821_p2 = scmp.ge.s32.totalorder %s606_s17, 1 }
  0x2f   : > { %p173_p5 = pnand %p821_p2, %p820_p1 }
  0x30   : > { %s743_s5 = sand.u32 (!%p173_p5), 1, %s590_s13  }
  0x31   : > { %176 = sbr.rel (%p173_p5) target bundleno = 297 (0x129), region = 32  ;;  %s416_s7 = sshll.u32 (!%p173_p5), %s743_s5, 3 }
  0x32   : > { %s179_s11 = scalar_lea.sflag (!%p173_p5), [#allocation3], %s743_s5  ;;  %s182_s18 = scalar_lea.vmem (!%p173_p5), [#allocation2], %s416_s7 }
  0x38   : > { %577 = dma.done.wait (%p679_p8), %s179_s11, 128  }
  0x39   : > { %579 = vsyncadd (%p679_p8), %s179_s11, 4294967168  ;;  %v609_v0 = vmov 0.0   ;;  %v610_v1 = vmov 0   ;;  %v207_v2 = vld [vmem:[%s182_s18] sm:$0xff]  ;;  %vm221_vm0 = vcmask 1043456   ;;  %vm217_vm1 = vcmask 31744  }
  0x3a   : > { %290 = vmatprep.mubr.f32.mxu0 %v609_v0  ;;  %492 = vset.pattern.permute.xlu0 %v610_v1  ;;  %v209_v3 = vld [vmem:[%s812_s2] sm:$0xf]  ;;  %v216_v4 = vcombine.high %v207_v2, %v207_v2  ;;  %s427_s24 = sshll.u32 %s598_s15, 7  ;;  %s204_s19 = scalar_lea.vmem [#allocation5], %s416_s7 }
  0x3b   : > { %212 = vperm.xlu0 %492, %v209_v3   ;;  %v208_v5 = vld [vmem:[%s811_s1] sm:$0xf]  ;;  %s324_s21 = sshll.u32 %s204_s19, 4  ;;  %s761_s28 = scalar_lea.hbm %s813_s3, %s427_s24  ;;  %s763_s21 = int_to_ptr.vmem [resolvable:$true] %s324_s21 }
  0x3c   : > { %418 = vmatprep.subr.msk.mxu0 %vm221_vm0, %v216_v4  ;;  %s308_s29 = scalar_lea.sflag [#allocation4], %s743_s5  ;;  %s524_s30 = scalar_lea.vmem %s763_s21, 128 }
  0x3d   : > { %419 = vmatpush1.msk.msra.mxu0 %vm221_vm0, %v207_v2  ;;  %p525_p8 = scmp.ne.s32.totalorder %s763_s21, %s524_s30  ;;  %p822_p9 = scmp.ne.s32.totalorder %s817_s25, 0 }
  0x3e   : > { %420 = vmatmul.mubr.msk.f32.vlgmr.msra.gmra.mrb[0].mxu0 %vm217_vm1, %v208_v5  ;;  %s611_s15 = smov [#allocation5]  }
  0x3f   : > { %p526_p11 = pnand %p525_p8, %p822_p9  ;;  %s528_s4 = sshll.u32 %s611_s15, 4  ;;  %s529_s4 = int_to_ptr.vmem [resolvable:$false] %s528_s4 }
  0x40   : > { %s530_s7 = scalar_lea.vmem %s529_s4, 256  ;;  %p531_p7 = scmp.lt.s32.totalorder %s763_s21, %s529_s4 }
  0x41   : > { %p527_p0 = pneg %p526_p11  ;;  %p532_p13 = scmp.lt.s32.totalorder %s530_s7, %s524_s30 }
  0x43   : > { %p533_p3 = por %p532_p13, %p531_p7 }
  0x45   : > { %p534_p6 = pnand %p533_p3, %p527_p0 }
  0xba   : > { %v213_v6 = vpop.permute.xlu0 %212 }
 0x111   : > { %v292_v7 = vpop.f32.mrb[0].mxu0 }
 0x112   : > { %v293_v8 = vadd.f32 %v292_v7, %v213_v6  ;;  %v294_v9 = vpop.f32.mrb[1].mxu0 }
 0x113   : > { %v295_v10 = vadd.f32 %v294_v9, %v213_v6 }
 0x114   : > { %v297_v11 = vmax.f32 %v293_v8, 0.0 }
 0x115   : > { %v298_v12 = vmax.f32 %v295_v10, 0.0 }
 0x116   : > { %v300_v13 = vadd.f32 %v297_v11, %v207_v2 }
 0x117   : > { %v301_v14 = vadd.f32 %v298_v12, %v216_v4 }
 0x119   : > { %v304_v15 = vcombine.low %v300_v13, %v301_v14 }
 0x11b   : > { %306 = vst [vmem:[%s204_s19] sm:$0xff] %v304_v15 }
 0x11c   : > { %537 = shalt.err (!%p534_p6)
}
 0x11d   : > { %s538_s5 = scalar_lea.hbm %s761_s28, 128  ;;  %s542_s6 = scalar_lea.hbm %s813_s3, 256 }
 0x11e   : > { %p539_p4 = scmp.ne.s32.totalorder %s761_s28, %s538_s5  ;;  %p543_p1 = scmp.lt.u32.totalorder %s761_s28, %s813_s3 }
 0x11f   : > { %p544_p2 = scmp.lt.u32.totalorder %s542_s6, %s538_s5  ;;  %p546_p8 = scmp.lt.u32.totalorder %s538_s5, %s761_s28 }
 0x120   : > { %p540_p10 = pnand %p539_p4, %p822_p9 }
 0x121   : > { %p545_p5 = por %p544_p2, %p543_p1 }
 0x122   : > { %p541_p12 = pneg %p540_p10 }
 0x123   : > { %p547_p11 = por %p546_p8, %p545_p5 }
 0x125   : > { %p548_p0 = pnand %p547_p11, %p541_p12 }
 0x127   : > { %551 = shalt.err (!%p548_p0)
}
 0x128   : > { %430 = dma.vmem_to_hbm [thread:$0]  (%p822_p9), %s763_s21, 128, %s761_s28, %s308_s29  }
 0x129 PF: > { %s336_s10 = sand.u32 1, %s586_s12   ;;  %p823_p7 = scmp.ne.s32.totalorder %s818_s27, 0 }
 0x12a   : > { %p824_p13 = scmp.ge.s32.totalorder %s606_s17, 2  ;;  %s337_s24 = scalar_lea.sflag [#allocation4], %s336_s10 }
 0x12c   : > { %p437_p3 = pnand %p824_p13, %p823_p7 }
 0x12e   : > { %581 = dma.done.wait (!%p437_p3), %s337_s24, 128  }
 0x12f   : > { %583 = vsyncadd (!%p437_p3), %s337_s24, 4294967168  ;;  %s19_s17 = sadd.s32 1, %s606_s17   ;;  %s825_s12 = smov %s590_s13 }
 0x130   : > { %p16_p6 = scmp.ge.s32.totalorder %s19_s17, 4   ;;  %s826_s13 = smov %s594_s14 }
 0x131   : > { %s827_s14 = smov %s688_s26  ;;  %s828_s15 = smov %s602_s16 }
 0x132   : > { %s829_s16 = smov %s831_s20  ;;  %18 = sbr.rel (!%p16_p6) target bundleno = 6 (0x6), region = 77 }
 0x139   :  { %342 = vsyncpa [#allocation3], 1 }
 0x13a   :  { %344 = vsyncpa [#allocation3 + $0x1], 1 }
 0x13b   :  { %345 = vsyncpa [#allocation4], 1 }
 0x13c   :  { %347 = vsyncpa [#allocation4 + $0x1], 1 }

</bundles_post_ra>
